<compile_context>
chip_gen: v6e
topology: v6e:2x2x1
jax: 0.10.0
libtpu: 0.0.40
codegen_flags: <defaults>
</compile_context>

<pallas_src>
import jax
import jax.numpy as jnp
from jax.experimental import pallas as pl
from jax.experimental.pallas import tpu as pltpu

LANE = 128  # TPU lane width; node + channel dims are padded to this.


# ------------------------------ padding utils --------------------------------
def _pad_to(a, axis, multiple=LANE):
    """Zero-pad `a` along `axis` up to a multiple of `multiple`."""
    pad = (-a.shape[axis]) % multiple
    if pad == 0:
        return a
    pads = [(0, 0)] * a.ndim
    pads[axis] = (0, pad)
    return jnp.pad(a, pads)


# ----------------------------- Pallas kernel ---------------------------------
def fused_gcn_kernel(a_ref, x_ref, w1_ref, b1_ref, w2_ref, b2_ref, o_ref):
    """out = A_hat @ relu(A_hat @ X @ W1 + b1) @ W2 + b2, all in one VMEM pass."""
    f32 = jnp.float32
    bf16 = jnp.bfloat16

    a = a_ref[...]                                       # [Np, Np] bf16, loaded once

    # ---- layer 1:  h = relu(A_hat @ X @ W1 + b1) -----------------------------
    ax = jnp.dot(a, x_ref[...], preferred_element_type=f32)            # [Np, Cp]
    h = jnp.dot(ax.astype(bf16), w1_ref[...], preferred_element_type=f32)
    h = jnp.maximum(h + b1_ref[...], 0.0)                # fused bias + ReLU epilogue
    # F.dropout(..., training=False) is the identity at eval time -> no-op.

    # ---- layer 2:  out = A_hat @ (h @ W2) + b2 --------------------------------
    hw = jnp.dot(h.astype(bf16), w2_ref[...], preferred_element_type=f32)
    out = jnp.dot(a, hw.astype(bf16), preferred_element_type=f32) + b2_ref[...]
    o_ref[...] = out.astype(o_ref.dtype)                 # lane-dense, unmasked store


def fused_gcn(a_hat, x, w1, b1, w2, b2):
    """Single fused pallas_call; every operand is a full VMEM-resident block."""
    n_p = a_hat.shape[0]
    cin_p = x.shape[1]
    hid_p = w1.shape[1]
    out_p = w2.shape[1]
    return pl.pallas_call(
        fused_gcn_kernel,
        out_shape=jax.ShapeDtypeStruct((n_p, out_p), jnp.float32),
        grid=(1,),
        in_specs=[
            pl.BlockSpec((n_p, n_p), lambda i: (0, 0)),      # A_hat   (bf16)
            pl.BlockSpec((n_p, cin_p), lambda i: (0, 0)),    # X       (bf16)
            pl.BlockSpec((cin_p, hid_p), lambda i: (0, 0)),  # W1      (bf16)
            pl.BlockSpec((1, hid_p), lambda i: (0, 0)),      # b1      (f32)
            pl.BlockSpec((hid_p, out_p), lambda i: (0, 0)),  # W2      (bf16)
            pl.BlockSpec((1, out_p), lambda i: (0, 0)),      # b2      (f32)
        ],
        out_specs=pl.BlockSpec((n_p, out_p), lambda i: (0, 0)),
        compiler_params=pltpu.CompilerParams(
            dimension_semantics=("arbitrary",),
            vmem_limit_bytes=32 * 1024 * 1024,
        ),
    )(a_hat, x, w1, b1, w2, b2)


# -------------------------------- glue JAX ------------------------------------
def normalized_adjacency(edge_index, edge_weight, num_nodes):
    """GCN normalization: add self-loops, A_hat = D^{-1/2} (A + I) D^{-1/2}.

    Dense [N, N] (bf16) with A_hat[dst, src] = norm(src -> dst), matching PyG's
    source_to_target message flow.  Normalization is computed in f32; the final
    adjacency is stored in bf16 (f32 accumulation happens on the MXU).
    """
    row = edge_index[0]  # source nodes
    col = edge_index[1]  # target nodes
    loop = jnp.arange(num_nodes, dtype=row.dtype)
    row = jnp.concatenate([row, loop])
    col = jnp.concatenate([col, loop])
    ew = jnp.concatenate(
        [edge_weight, jnp.ones((num_nodes,), edge_weight.dtype)])

    deg = jnp.zeros((num_nodes,), ew.dtype).at[col].add(ew)
    deg_inv_sqrt = jnp.where(deg > 0.0, jax.lax.rsqrt(deg), 0.0)
    norm = deg_inv_sqrt[row] * ew * deg_inv_sqrt[col]

    a_hat = jnp.zeros((num_nodes, num_nodes), jnp.float32).at[col, row].add(norm)
    return a_hat.astype(jnp.bfloat16)


def gcn_forward(x, edge_index, edge_weight, params):
    n = x.shape[0]
    out_channels = params["w2"].shape[1]

    a_hat = normalized_adjacency(edge_index, edge_weight, n)

    # Zero-pad node dim + all channel dims up to 128 so every MXU pass and
    # every store in the fused kernel is lane-dense (no masked vld/vst); the
    # padding is exact because all padded rows/cols are zero.  Cast the MXU
    # operands to bf16 in the wrapper to halve HBM->VMEM traffic.
    bf16 = jnp.bfloat16
    a_p = _pad_to(_pad_to(a_hat, 0), 1)                              # [Np, Np]
    x_p = _pad_to(_pad_to(x, 0), 1).astype(bf16)                     # [Np, 128]
    w1_p = _pad_to(_pad_to(params["w1"], 0), 1).astype(bf16)         # [128, 128]
    b1_p = _pad_to(params["b1"], 1)                                  # [1, 128] f32
    w2_p = _pad_to(_pad_to(params["w2"], 0), 1).astype(bf16)         # [128, 128]
    b2_p = _pad_to(params["b2"], 1)                                  # [1, 128] f32

    out_pad = fused_gcn(a_p, x_p, w1_p, b1_p, w2_p, b2_p)
    return out_pad[:n, :out_channels]


def init_params(key, in_channels, hidden, out_channels):
    """Deterministic Glorot-uniform weights + zero biases (PyG GCNConv init)."""
    k1, k2 = jax.random.split(key)

    def glorot(k, fan_in, fan_out):
        limit = (6.0 / (fan_in + fan_out)) ** 0.5
        return jax.random.uniform(
            k, (fan_in, fan_out), jnp.float32, -limit, limit)

    return {
        "w1": glorot(k1, in_channels, hidden),
        "b1": jnp.zeros((1, hidden), jnp.float32),
        "w2": glorot(k2, hidden, out_channels),
        "b2": jnp.zeros((1, out_channels), jnp.float32),
    }


# ---------------------------------- main --------------------------------------
if __name__ == "__main__":
    key = jax.random.PRNGKey(0)
    k_x, k_e, k_w, k_p = jax.random.split(key, 4)

    num_nodes = 16
    in_channels = 8
    hidden = 16          # fixed by the module (GCNConv(in, 16))
    out_channels = 4
    num_edges = 40

    x = jax.random.normal(k_x, (num_nodes, in_channels), jnp.float32)
    edge_index = jax.random.randint(
        k_e, (2, num_edges), minval=0, maxval=num_nodes, dtype=jnp.int32)
    edge_weight = jax.random.uniform(
        k_w, (num_edges,), jnp.float32, minval=0.1, maxval=1.0)

    params = init_params(k_p, in_channels, hidden, out_channels)

    out = jax.jit(gcn_forward)(x, edge_index, edge_weight, params)
    jax.block_until_ready(out)
    assert out.shape == (num_nodes, out_channels)
    print("KERNEL_OK")
</pallas_src>

<mosaic_0001>
module attributes {stable_mosaic.version = 11 : i64} {
  func.func private @main(%arg0: i32) attributes {dimension_semantics = [#tpu.dimension_semantics<core_parallel>], iteration_bounds = array<i64: 2>, tpu.core_type = #tpu.core_type<sc_scalar_subcore>, window_params = []} {
    return
  }
}

module attributes {stable_mosaic.version = 11 : i64} {
  func.func private @main(%arg0: i32) attributes {dimension_semantics = [#tpu.dimension_semantics<core_parallel>], iteration_bounds = array<i64: 2>, tpu.core_type = #tpu.core_type<sc_scalar_subcore>, window_params = []} {
    return
  }
}

module attributes {stable_mosaic.version = 11 : i64} {
  func.func @fused_gcn_kernel(%arg0: i32, %arg1: memref<128x128xbf16, #tpu.memory_space<vmem>>, %arg2: memref<128x128xbf16, #tpu.memory_space<vmem>>, %arg3: memref<128x128xbf16, #tpu.memory_space<vmem>>, %arg4: memref<1x128xf32, #tpu.memory_space<vmem>>, %arg5: memref<128x128xbf16, #tpu.memory_space<vmem>>, %arg6: memref<1x128xf32, #tpu.memory_space<vmem>>, %arg7: memref<128x128xf32, #tpu.memory_space<vmem>>) attributes {dimension_semantics = [#tpu.dimension_semantics<arbitrary>], iteration_bounds = array<i64: 1>, scalar_prefetch = 0 : i64, scratch_operands = 0 : i64, tpu.core_type = #tpu.core_type<tc>, window_params = [{pipeline_mode = #tpu.pipeline_mode<synchronous>, transform_indices = @transform_0, window_bounds = array<i64: 128, 128>}, {pipeline_mode = #tpu.pipeline_mode<synchronous>, transform_indices = @transform_1, window_bounds = array<i64: 128, 128>}, {pipeline_mode = #tpu.pipeline_mode<synchronous>, transform_indices = @transform_2, window_bounds = array<i64: 128, 128>}, {pipeline_mode = #tpu.pipeline_mode<synchronous>, transform_indices = @transform_3, window_bounds = array<i64: 1, 128>}, {pipeline_mode = #tpu.pipeline_mode<synchronous>, transform_indices = @transform_4, window_bounds = array<i64: 128, 128>}, {pipeline_mode = #tpu.pipeline_mode<synchronous>, transform_indices = @transform_5, window_bounds = array<i64: 1, 128>}, {pipeline_mode = #tpu.pipeline_mode<synchronous>, transform_indices = @transform_6, window_bounds = array<i64: 128, 128>}]} {
    %c0 = arith.constant 0 : index
    %c0_0 = arith.constant 0 : index
    %0 = vector.load %arg1[%c0, %c0_0] : memref<128x128xbf16, #tpu.memory_space<vmem>>, vector<128x128xbf16>
    %c0_1 = arith.constant 0 : index
    %c0_2 = arith.constant 0 : index
    %1 = vector.load %arg2[%c0_1, %c0_2] : memref<128x128xbf16, #tpu.memory_space<vmem>>, vector<128x128xbf16>
    %cst = arith.constant dense<0.000000e+00> : vector<128x128xf32>
    %2 = tpu.matmul %0, %1, %cst {dimension_numbers = #tpu.dot_dimension_numbers<[1], [0], [0], [1], [0, 0, 1, 1], [], []>} : vector<128x128xbf16>, vector<128x128xbf16>, vector<128x128xf32> -> vector<128x128xf32>
    %3 = arith.truncf %2 : vector<128x128xf32> to vector<128x128xbf16>
    %c0_3 = arith.constant 0 : index
    %c0_4 = arith.constant 0 : index
    %4 = vector.load %arg3[%c0_3, %c0_4] : memref<128x128xbf16, #tpu.memory_space<vmem>>, vector<128x128xbf16>
    %cst_5 = arith.constant dense<0.000000e+00> : vector<128x128xf32>
    %5 = tpu.matmul %3, %4, %cst_5 {dimension_numbers = #tpu.dot_dimension_numbers<[1], [0], [0], [1], [0, 0, 1, 1], [], []>} : vector<128x128xbf16>, vector<128x128xbf16>, vector<128x128xf32> -> vector<128x128xf32>
    %c0_6 = arith.constant 0 : index
    %c0_7 = arith.constant 0 : index
    %6 = vector.load %arg4[%c0_6, %c0_7] : memref<1x128xf32, #tpu.memory_space<vmem>>, vector<1x128xf32>
    %7 = vector.broadcast %6 : vector<1x128xf32> to vector<128x128xf32>
    %8 = arith.addf %5, %7 : vector<128x128xf32>
    %cst_8 = arith.constant 0.000000e+00 : f32
    %9 = vector.broadcast %cst_8 : f32 to vector<128x128xf32>
    %10 = arith.maximumf %8, %9 : vector<128x128xf32>
    %11 = arith.truncf %10 : vector<128x128xf32> to vector<128x128xbf16>
    %c0_9 = arith.constant 0 : index
    %c0_10 = arith.constant 0 : index
    %12 = vector.load %arg5[%c0_9, %c0_10] : memref<128x128xbf16, #tpu.memory_space<vmem>>, vector<128x128xbf16>
    %cst_11 = arith.constant dense<0.000000e+00> : vector<128x128xf32>
    %13 = tpu.matmul %11, %12, %cst_11 {dimension_numbers = #tpu.dot_dimension_numbers<[1], [0], [0], [1], [0, 0, 1, 1], [], []>} : vector<128x128xbf16>, vector<128x128xbf16>, vector<128x128xf32> -> vector<128x128xf32>
    %14 = arith.truncf %13 : vector<128x128xf32> to vector<128x128xbf16>
    %cst_12 = arith.constant dense<0.000000e+00> : vector<128x128xf32>
    %15 = tpu.matmul %0, %14, %cst_12 {dimension_numbers = #tpu.dot_dimension_numbers<[1], [0], [0], [1], [0, 0, 1, 1], [], []>} : vector<128x128xbf16>, vector<128x128xbf16>, vector<128x128xf32> -> vector<128x128xf32>
    %c0_13 = arith.constant 0 : index
    %c0_14 = arith.constant 0 : index
    %16 = vector.load %arg6[%c0_13, %c0_14] : memref<1x128xf32, #tpu.memory_space<vmem>>, vector<1x128xf32>
    %17 = vector.broadcast %16 : vector<1x128xf32> to vector<128x128xf32>
    %18 = arith.addf %15, %17 : vector<128x128xf32>
    %c0_15 = arith.constant 0 : index
    %c0_16 = arith.constant 0 : index
    %19 = vector.load %arg7[%c0_15, %c0_16] : memref<128x128xf32, #tpu.memory_space<vmem>>, vector<128x128xf32>
    tpu.vector_store %arg7[%c0_15, %c0_16], %18 {strides = array<i32>} : memref<128x128xf32, #tpu.memory_space<vmem>>, vector<128x128xf32>,
    return
  }
  func.func @transform_0(%arg0: i32) -> (i32, i32) {
    %c0_i32 = arith.constant 0 : i32
    %c0_i32_0 = arith.constant 0 : i32
    %c0_i32_1 = arith.constant 0 : i32
    return %c0_i32, %c0_i32_0 : i32, i32
  }
  func.func @transform_1(%arg0: i32) -> (i32, i32) {
    %c0_i32 = arith.constant 0 : i32
    %c0_i32_0 = arith.constant 0 : i32
    %c0_i32_1 = arith.constant 0 : i32
    return %c0_i32, %c0_i32_0 : i32, i32
  }
  func.func @transform_2(%arg0: i32) -> (i32, i32) {
    %c0_i32 = arith.constant 0 : i32
    %c0_i32_0 = arith.constant 0 : i32
    %c0_i32_1 = arith.constant 0 : i32
    return %c0_i32, %c0_i32_0 : i32, i32
  }
  func.func @transform_3(%arg0: i32) -> (i32, i32) {
    %c0_i32 = arith.constant 0 : i32
    %c0_i32_0 = arith.constant 0 : i32
    %c0_i32_1 = arith.constant 0 : i32
    return %c0_i32, %c0_i32_0 : i32, i32
  }
  func.func @transform_4(%arg0: i32) -> (i32, i32) {
    %c0_i32 = arith.constant 0 : i32
    %c0_i32_0 = arith.constant 0 : i32
    %c0_i32_1 = arith.constant 0 : i32
    return %c0_i32, %c0_i32_0 : i32, i32
  }
  func.func @transform_5(%arg0: i32) -> (i32, i32) {
    %c0_i32 = arith.constant 0 : i32
    %c0_i32_0 = arith.constant 0 : i32
    %c0_i32_1 = arith.constant 0 : i32
    return %c0_i32, %c0_i32_0 : i32, i32
  }
  func.func @transform_6(%arg0: i32) -> (i32, i32) {
    %c0_i32 = arith.constant 0 : i32
    %c0_i32_0 = arith.constant 0 : i32
    %c0_i32_1 = arith.constant 0 : i32
    return %c0_i32, %c0_i32_0 : i32, i32
  }
}

</mosaic_0001>

<bundles_post_ra>
// kernel: gcn_forward.1
= control target key start
LH: loop header
LB: loop body
LE: loop exit
PB: predicated region body
PF: predicated region fallthrough
CT: control target
= control target key end

     0   :  { %s1217_s1 = inlined_call_operand.vmem [shape: bf16[128,128], index: 1, kind: input, shape index: {}]   ;;  %s1218_s0 = inlined_call_operand.vmem [shape: bf16[128,128], index: 0, kind: input, shape index: {}]   ;;  %s1219_s2 = inlined_call_operand.vmem [shape: bf16[128,128], index: 2, kind: input, shape index: {}]   ;;  %s1220_s4 = inlined_call_operand.vmem [shape: bf16[128,128], index: 4, kind: input, shape index: {}]   ;;  %s1221_s3 = inlined_call_operand.vmem [shape: f32[1,128], index: 3, kind: input, shape index: {}]   ;;  %s1222_s5 = inlined_call_operand.vmem [shape: f32[1,128], index: 5, kind: input, shape index: {}]   ;;  %s1223_s6 = inlined_call_operand.vmem [shape: f32[128,128], index: 6, kind: output, shape index: {}]  }
   0x1   :  { %v968_v0 = vld [vmem:[%s1217_s1 + $0x38] sm:$0xff]   ;;  %v969_v1 = vld [vmem:[%s1217_s1 + $0x30] sm:$0xff]   ;;  %v970_v2 = vld [vmem:[%s1217_s1 + $0x28] sm:$0xff]  }
   0x2   :  { %840 = vmatprep.subr.bf16.mxu0 %v968_v0  ;;  %v971_v3 = vld [vmem:[%s1217_s1 + $0x20] sm:$0xff]   ;;  %v972_v5 = vld [vmem:[%s1217_s1 + $0x18] sm:$0xff]   ;;  %v973_v6 = vld [vmem:[%s1217_s1 + $0x10] sm:$0xff]  }
   0x3   :  { %841 = vmatpush3.bf16.msra.mxu0 %v968_v0  ;;  %v1050_v4 = vld [vmem:[%s1218_s0] sm:$0xff]   ;;  %v984_v7 = vld [vmem:[%s1219_s2 + $0x38] sm:$0xff]   ;;  %v985_v8 = vld [vmem:[%s1219_s2 + $0x30] sm:$0xff]  }
   0x4   :  { %842 = vmatprep.subr.bf16.mxu0 %v969_v1  ;;  %856 = vmatprep.mubr.bf16.mxu0 %v1050_v4  ;;  %v974_v9 = vld [vmem:[%s1217_s1 + $0x8] sm:$0xff]   ;;  %v975_v11 = vld [vmem:[%s1217_s1] sm:$0xff]   ;;  %v988_v13 = vld [vmem:[%s1219_s2 + $0x18] sm:$0xff]  }
   0x5   :  { %872 = vmatprep.subr.bf16.mxu1 %v984_v7  ;;  %v986_v10 = vld [vmem:[%s1219_s2 + $0x28] sm:$0xff]   ;;  %v987_v12 = vld [vmem:[%s1219_s2 + $0x20] sm:$0xff]   ;;  %v1088_v15 = vld [vmem:[%s1218_s0 + $0x10] sm:$0xff]  }
   0x6   :  { %873 = vmatpush3.bf16.msra.mxu1 %v984_v7  ;;  %v1083_v14 = vld [vmem:[%s1218_s0 + $0x8] sm:$0xff]   ;;  %v989_v16 = vld [vmem:[%s1219_s2 + $0x10] sm:$0xff]   ;;  %v1098_v17 = vld [vmem:[%s1218_s0 + $0x18] sm:$0xff]  }
   0x7   :  { %843 = vmatpush3.bf16.msra.mxu0 %v969_v1  ;;  %874 = vmatprep.subr.bf16.mxu1 %v985_v8  ;;  %v1103_v18 = vld [vmem:[%s1218_s0 + $0x20] sm:$0xff]   ;;  %v1110_v19 = vld [vmem:[%s1218_s0 + $0x28] sm:$0xff]   ;;  %v1115_v20 = vld [vmem:[%s1218_s0 + $0x30] sm:$0xff]  }
   0x8   :  { %844 = vmatprep.subr.bf16.mxu0 %v970_v2  ;;  %v1122_v21 = vld [vmem:[%s1218_s0 + $0x38] sm:$0xff]   ;;  %v990_v22 = vld [vmem:[%s1219_s2 + $0x8] sm:$0xff]   ;;  %v991_v23 = vld [vmem:[%s1219_s2] sm:$0xff]  }
   0x9   :  { %v992_v24 = vld [vmem:[%s1220_s4 + $0x38] sm:$0xff]   ;;  %v993_v25 = vld [vmem:[%s1220_s4 + $0x30] sm:$0xff]   ;;  %v994_v26 = vld [vmem:[%s1220_s4 + $0x28] sm:$0xff]  }
   0xa   :  { %875 = vmatpush3.bf16.msra.mxu1 %v985_v8  ;;  %v995_v27 = vld [vmem:[%s1220_s4 + $0x20] sm:$0xff]   ;;  %v996_v28 = vld [vmem:[%s1220_s4 + $0x18] sm:$0xff]   ;;  %v997_v53 = vld [vmem:[%s1220_s4 + $0x10] sm:$0xff]  }
   0xb   :  { %845 = vmatpush3.bf16.msra.mxu0 %v970_v2  ;;  %876 = vmatprep.subr.bf16.mxu1 %v986_v10  ;;  %v998_v54 = vld [vmem:[%s1220_s4 + $0x8] sm:$0xff]   ;;  %v999_v55 = vld [vmem:[%s1220_s4] sm:$0xff]  }
   0xc   :  { %846 = vmatprep.subr.bf16.mxu0 %v971_v3  ;;  %v758_v58 = vld [vmem:[%s1221_s3] ss:$0 sm:$0xff] }
   0xe   :  { %877 = vmatpush3.bf16.msra.mxu1 %v986_v10 }
   0xf   :  { %847 = vmatpush3.bf16.msra.mxu0 %v971_v3  ;;  %878 = vmatprep.subr.bf16.mxu1 %v987_v12 }
  0x10   :  { %848 = vmatprep.subr.bf16.mxu0 %v972_v5 }
  0x12   :  { %879 = vmatpush3.bf16.msra.mxu1 %v987_v12 }
  0x13   :  { %849 = vmatpush3.bf16.msra.mxu0 %v972_v5  ;;  %880 = vmatprep.subr.bf16.mxu1 %v988_v13 }
  0x14   :  { %850 = vmatprep.subr.bf16.mxu0 %v973_v6 }
  0x16   :  { %881 = vmatpush3.bf16.msra.mxu1 %v988_v13 }
  0x17   :  { %851 = vmatpush3.bf16.msra.mxu0 %v973_v6  ;;  %882 = vmatprep.subr.bf16.mxu1 %v989_v16 }
  0x18   :  { %852 = vmatprep.subr.bf16.mxu0 %v974_v9 }
  0x1a   :  { %883 = vmatpush3.bf16.msra.mxu1 %v989_v16 }
  0x1b   :  { %853 = vmatpush3.bf16.msra.mxu0 %v974_v9  ;;  %884 = vmatprep.subr.bf16.mxu1 %v990_v22 }
  0x1c   :  { %854 = vmatprep.subr.bf16.mxu0 %v975_v11 }
  0x1e   :  { %885 = vmatpush3.bf16.msra.mxu1 %v990_v22 }
  0x1f   :  { %855 = vmatpush3.bf16.msra.mxu0 %v975_v11  ;;  %886 = vmatprep.subr.bf16.mxu1 %v991_v23 }
  0x20   :  { %904 = vmatprep.subr.bf16.mxu0 %v992_v24 }
  0x22   :  { %857 = vmatmul.mubr.bf16.vlgmr.msra.gmra.mxu0 %v1083_v14  ;;  %887 = vmatpush3.bf16.msra.mxu1 %v991_v23 }
  0x23   :  { %860 = vmatprep.mubr.bf16.mxu0 %v1088_v15  ;;  %905 = vmatpush3.bf16.msra.mxu0 %v992_v24 }
  0x24   :  { %906 = vmatprep.subr.bf16.mxu0 %v993_v25 }
  0x27   :  { %907 = vmatpush3.bf16.msra.mxu0 %v993_v25 }
  0x28   :  { %908 = vmatprep.subr.bf16.mxu0 %v994_v26 }
  0x2a   :  { %861 = vmatmul.mubr.bf16.gmra.mxu0 %v1098_v17 }
  0x2b   :  { %864 = vmatprep.mubr.bf16.mxu0 %v1103_v18  ;;  %909 = vmatpush3.bf16.msra.mxu0 %v994_v26 }
  0x2c   :  { %910 = vmatprep.subr.bf16.mxu0 %v995_v27 }
  0x2f   :  { %911 = vmatpush3.bf16.msra.mxu0 %v995_v27 }
  0x30   :  { %912 = vmatprep.subr.bf16.mxu0 %v996_v28 }
  0x32   :  { %865 = vmatmul.mubr.bf16.gmra.mxu0 %v1110_v19 }
  0x33   :  { %868 = vmatprep.mubr.bf16.mxu0 %v1115_v20  ;;  %913 = vmatpush3.bf16.msra.mxu0 %v996_v28 }
  0x34   :  { %914 = vmatprep.subr.bf16.mxu0 %v997_v53 }
  0x37   :  { %915 = vmatpush3.bf16.msra.mxu0 %v997_v53 }
  0x38   :  { %916 = vmatprep.subr.bf16.mxu0 %v998_v54 }
  0x3a   :  { %869 = vmatmul.mubr.bf16.gmra.mxu0 %v1122_v21 }
  0x3b   :  { %917 = vmatpush3.bf16.msra.mxu0 %v998_v54 }
  0x3c   :  { %918 = vmatprep.subr.bf16.mxu0 %v999_v55 }
  0x3f   :  { %919 = vmatpush3.bf16.msra.mxu0 %v999_v55 }
  0xe2   :  { %v858_v29 = vpop.f32.mrf.mxu0 }
  0xe4   :  { %v186_v30 = vpop.f32.mrf.mxu0 }
  0xe6   :  { %v859_v31 = vpop.f32.mrf.mxu0 }
  0xe7   :  { %v250_v34 = vpack.c.bf16 %v859_v31, %v858_v29 }
  0xe8   :  { %v189_v32 = vpop.f32.mrf.mxu0 }
  0xe9   :  { %v249_v33 = vpack.c.bf16 %v189_v32, %v186_v30 }
  0xea   :  { %v862_v35 = vpop.f32.mrf.mxu0 }
  0xeb   :  { %888 = vmatprep.mubr.bf16.mxu1 %v249_v33 }
  0xec   :  { %v202_v36 = vpop.f32.mrf.mxu0  ;;  %889 = vmatmul.mubr.bf16.vlgmr.msra.gmra.mxu1 %v250_v34 }
  0xee   :  { %v863_v37 = vpop.f32.mrf.mxu0 }
  0xef   :  { %v252_v40 = vpack.c.bf16 %v863_v37, %v862_v35 }
  0xf0   :  { %v205_v38 = vpop.f32.mrf.mxu0 }
  0xf1   :  { %v251_v39 = vpack.c.bf16 %v205_v38, %v202_v36 }
  0xf2   :  { %v866_v41 = vpop.f32.mrf.mxu0 }
  0xf3   :  { %892 = vmatprep.mubr.bf16.mxu1 %v251_v39 }
  0xf4   :  { %v218_v42 = vpop.f32.mrf.mxu0  ;;  %893 = vmatmul.mubr.bf16.gmra.mxu1 %v252_v40 }
  0xf6   :  { %v867_v43 = vpop.f32.mrf.mxu0 }
  0xf7   :  { %v254_v46 = vpack.c.bf16 %v867_v43, %v866_v41 }
  0xf8   :  { %v221_v44 = vpop.f32.mrf.mxu0 }
  0xf9   :  { %v253_v45 = vpack.c.bf16 %v221_v44, %v218_v42 }
  0xfa   :  { %v870_v47 = vpop.f32.mrf.mxu0 }
  0xfb   :  { %896 = vmatprep.mubr.bf16.mxu1 %v253_v45 }
  0xfc   :  { %v234_v48 = vpop.f32.mrf.mxu0  ;;  %897 = vmatmul.mubr.bf16.gmra.mxu1 %v254_v46 }
  0xfe   :  { %v871_v49 = vpop.f32.mrf.mxu0 }
  0xff   :  { %v256_v52 = vpack.c.bf16 %v871_v49, %v870_v47 }
 0x100   :  { %v237_v50 = vpop.f32.mrf.mxu0 }
 0x101   :  { %v255_v51 = vpack.c.bf16 %v237_v50, %v234_v48 }
 0x103   :  { %900 = vmatprep.mubr.bf16.mxu1 %v255_v51 }
 0x104   :  { %901 = vmatmul.mubr.bf16.gmra.mxu1 %v256_v52 }
 0x105   :  { %952 = vmatprep.mubr.bf16.mxu1 %v1050_v4 }
 0x1ac   :  { %v890_v56 = vpop.f32.mrf.mxu1 }
 0x1ad   :  { %v371_v62 = vadd.f32 %v890_v56, %v758_v58 }
 0x1ae   :  { %v362_v57 = vpop.f32.mrf.mxu1 }
 0x1af   :  { %v363_v60 = vadd.f32 %v758_v58, %v362_v57  ;;  %v427_v5 = vmax.f32 %v371_v62, 0.0 }
 0x1b0   :  { %v891_v59 = vpop.f32.mrf.mxu1 }
 0x1b1   :  { %v374_v61 = vadd.f32 %v891_v59, %v758_v58  ;;  %v425_v3 = vmax.f32 %v363_v60, 0.0 }
 0x1b2   :  { %v365_v63 = vpop.f32.mrf.mxu1 }
 0x1b3   :  { %v366_v0 = vadd.f32 %v758_v58, %v365_v63  ;;  %v428_v1 = vmax.f32 %v374_v61, 0.0 }
 0x1b4   :  { %v894_v2 = vpop.f32.mrf.mxu1 }
 0x1b5   :  { %v426_v4 = vmax.f32 %v366_v0, 0.0  ;;  %v442_v8 = vpack.c.bf16 %v428_v1, %v427_v5  ;;  %v387_v12 = vadd.f32 %v894_v2, %v758_v58 }
 0x1b6   :  { %v378_v6 = vpop.f32.mrf.mxu1 }
 0x1b7   :  { %v441_v7 = vpack.c.bf16 %v426_v4, %v425_v3  ;;  %v379_v10 = vadd.f32 %v758_v58, %v378_v6  ;;  %v431_v26 = vmax.f32 %v387_v12, 0.0 }
 0x1b8   :  { %v895_v9 = vpop.f32.mrf.mxu1 }
 0x1b9   :  { %v390_v11 = vadd.f32 %v895_v9, %v758_v58  ;;  %920 = vmatprep.mubr.bf16.mxu0 %v441_v7  ;;  %v429_v24 = vmax.f32 %v379_v10, 0.0 }
 0x1ba   :  { %v381_v13 = vpop.f32.mrf.mxu1  ;;  %921 = vmatmul.mubr.bf16.vlgmr.msra.gmra.mxu0 %v442_v8 }
 0x1bb   :  { %v382_v16 = vadd.f32 %v758_v58, %v381_v13  ;;  %v432_v22 = vmax.f32 %v390_v11, 0.0 }
 0x1bc   :  { %v898_v23 = vpop.f32.mrf.mxu1 }
 0x1bd   :  { %v430_v25 = vmax.f32 %v382_v16, 0.0  ;;  %v444_v29 = vpack.c.bf16 %v432_v22, %v431_v26  ;;  %v403_v33 = vadd.f32 %v898_v23, %v758_v58  ;;  %v775_v23 = vld [vmem:[%s1222_s5] ss:$0 sm:$0xff] }
 0x1be   :  { %v394_v27 = vpop.f32.mrf.mxu1 }
 0x1bf   :  { %v443_v28 = vpack.c.bf16 %v430_v25, %v429_v24  ;;  %v395_v31 = vadd.f32 %v758_v58, %v394_v27  ;;  %v435_v40 = vmax.f32 %v403_v33, 0.0 }
 0x1c0   :  { %v899_v30 = vpop.f32.mrf.mxu1 }
 0x1c1   :  { %v406_v32 = vadd.f32 %v899_v30, %v758_v58  ;;  %924 = vmatprep.mubr.bf16.mxu0 %v443_v28  ;;  %v433_v38 = vmax.f32 %v395_v31, 0.0 }
 0x1c2   :  { %v397_v34 = vpop.f32.mrf.mxu1  ;;  %925 = vmatmul.mubr.bf16.gmra.mxu0 %v444_v29 }
 0x1c3   :  { %v398_v35 = vadd.f32 %v758_v58, %v397_v34  ;;  %v436_v36 = vmax.f32 %v406_v32, 0.0 }
 0x1c4   :  { %v902_v37 = vpop.f32.mrf.mxu1 }
 0x1c5   :  { %v434_v39 = vmax.f32 %v398_v35, 0.0  ;;  %v446_v43 = vpack.c.bf16 %v436_v36, %v435_v40  ;;  %v419_v47 = vadd.f32 %v902_v37, %v758_v58 }
 0x1c6   :  { %v410_v41 = vpop.f32.mrf.mxu1 }
 0x1c7   :  { %v445_v42 = vpack.c.bf16 %v434_v39, %v433_v38  ;;  %v411_v45 = vadd.f32 %v758_v58, %v410_v41  ;;  %v439_v53 = vmax.f32 %v419_v47, 0.0 }
 0x1c8   :  { %v903_v44 = vpop.f32.mrf.mxu1 }
 0x1c9   :  { %v422_v46 = vadd.f32 %v903_v44, %v758_v58  ;;  %928 = vmatprep.mubr.bf16.mxu0 %v445_v42  ;;  %v437_v51 = vmax.f32 %v411_v45, 0.0 }
 0x1ca   :  { %v413_v48 = vpop.f32.mrf.mxu1  ;;  %929 = vmatmul.mubr.bf16.gmra.mxu0 %v446_v43 }
 0x1cb   :  { %v414_v49 = vadd.f32 %v758_v58, %v413_v48  ;;  %v440_v50 = vmax.f32 %v422_v46, 0.0 }
 0x1cd   :  { %v438_v52 = vmax.f32 %v414_v49, 0.0  ;;  %v448_v55 = vpack.c.bf16 %v440_v50, %v439_v53 }
 0x1cf   :  { %v447_v54 = vpack.c.bf16 %v438_v52, %v437_v51 }
 0x1d1   :  { %932 = vmatprep.mubr.bf16.mxu0 %v447_v54 }
 0x1d2   :  { %933 = vmatmul.mubr.bf16.gmra.mxu0 %v448_v55 }
 0x27a   :  { %v922_v56 = vpop.f32.mrf.mxu0 }
 0x27c   :  { %v547_v57 = vpop.f32.mrf.mxu0 }
 0x27e   :  { %v923_v59 = vpop.f32.mrf.mxu0 }
 0x27f   :  { %v611_v16 = vpack.c.bf16 %v923_v59, %v922_v56 }
 0x280   :  { %v550_v60 = vpop.f32.mrf.mxu0 }
 0x281   :  { %v610_v22 = vpack.c.bf16 %v550_v60, %v547_v57 }
 0x282   :  { %v926_v61 = vpop.f32.mrf.mxu0 }
 0x284   :  { %v563_v62 = vpop.f32.mrf.mxu0 }
 0x286   :  { %v927_v63 = vpop.f32.mrf.mxu0 }
 0x287   :  { %v613_v12 = vpack.c.bf16 %v927_v63, %v926_v61 }
 0x288   :  { %v566_v0 = vpop.f32.mrf.mxu0 }
 0x289   :  { %v612_v13 = vpack.c.bf16 %v566_v0, %v563_v62 }
 0x28a   :  { %v930_v1 = vpop.f32.mrf.mxu0 }
 0x28c   :  { %v579_v2 = vpop.f32.mrf.mxu0 }
 0x28e   :  { %v931_v3 = vpop.f32.mrf.mxu0 }
 0x28f   :  { %v615_v10 = vpack.c.bf16 %v931_v3, %v930_v1 }
 0x290   :  { %v582_v58 = vpop.f32.mrf.mxu0 }
 0x291   :  { %v614_v11 = vpack.c.bf16 %v582_v58, %v579_v2 }
 0x292   :  { %v934_v4 = vpop.f32.mrf.mxu0 }
 0x294   :  { %v595_v5 = vpop.f32.mrf.mxu0 }
 0x296   :  { %v935_v6 = vpop.f32.mrf.mxu0 }
 0x297   :  { %v617_v7 = vpack.c.bf16 %v935_v6, %v934_v4 }
 0x298   :  { %v598_v8 = vpop.f32.mrf.mxu0 }
 0x299   :  { %v616_v9 = vpack.c.bf16 %v598_v8, %v595_v5  ;;  %936 = vmatprep.subr.bf16.mxu1 %v617_v7 }
 0x29a   :  { %937 = vmatpush3.bf16.msra.mxu1 %v617_v7 }
 0x29b   :  { %938 = vmatprep.subr.bf16.mxu1 %v616_v9 }
 0x29e   :  { %939 = vmatpush3.bf16.msra.mxu1 %v616_v9 }
 0x29f   :  { %940 = vmatprep.subr.bf16.mxu1 %v615_v10 }
 0x2a2   :  { %941 = vmatpush3.bf16.msra.mxu1 %v615_v10 }
 0x2a3   :  { %942 = vmatprep.subr.bf16.mxu1 %v614_v11 }
 0x2a6   :  { %943 = vmatpush3.bf16.msra.mxu1 %v614_v11 }
 0x2a7   :  { %944 = vmatprep.subr.bf16.mxu1 %v613_v12 }
 0x2aa   :  { %945 = vmatpush3.bf16.msra.mxu1 %v613_v12 }
 0x2ab   :  { %946 = vmatprep.subr.bf16.mxu1 %v612_v13 }
 0x2ae   :  { %947 = vmatpush3.bf16.msra.mxu1 %v612_v13 }
 0x2af   :  { %948 = vmatprep.subr.bf16.mxu1 %v611_v16 }
 0x2b2   :  { %949 = vmatpush3.bf16.msra.mxu1 %v611_v16 }
 0x2b3   :  { %950 = vmatprep.subr.bf16.mxu1 %v610_v22 }
 0x2b6   :  { %951 = vmatpush3.bf16.msra.mxu1 %v610_v22 }
 0x2b9   :  { %953 = vmatmul.mubr.bf16.vlgmr.msra.gmra.mxu1 %v1083_v14 }
 0x2ba   :  { %956 = vmatprep.mubr.bf16.mxu1 %v1088_v15 }
 0x2c1   :  { %957 = vmatmul.mubr.bf16.gmra.mxu1 %v1098_v17 }
 0x2c2   :  { %960 = vmatprep.mubr.bf16.mxu1 %v1103_v18 }
 0x2c9   :  { %961 = vmatmul.mubr.bf16.gmra.mxu1 %v1110_v19 }
 0x2ca   :  { %964 = vmatprep.mubr.bf16.mxu1 %v1115_v20 }
 0x2d1   :  { %965 = vmatmul.mubr.bf16.gmra.mxu1 %v1122_v21 }
 0x379   :  { %v954_v24 = vpop.f32.mrf.mxu1 }
 0x37a   :  { %v668_v25 = vadd.f32 %v954_v24, %v775_v23 }
 0x37b   :  { %v659_v26 = vpop.f32.mrf.mxu1 }
 0x37c   :  { %724 = vst [vmem:[%s1223_s6 + $0x10] sm:$0xff] %v668_v25  ;;  %v660_v14 = vadd.f32 %v775_v23, %v659_v26 }
 0x37d   :  { %v955_v15 = vpop.f32.mrf.mxu1 }
 0x37e   :  { %722 = vst [vmem:[%s1223_s6] sm:$0xff] %v660_v14  ;;  %v671_v17 = vadd.f32 %v955_v15, %v775_v23 }
 0x37f   :  { %v662_v18 = vpop.f32.mrf.mxu1 }
 0x380   :  { %725 = vst [vmem:[%s1223_s6 + $0x18] sm:$0xff] %v671_v17  ;;  %v663_v19 = vadd.f32 %v775_v23, %v662_v18 }
 0x381   :  { %v958_v20 = vpop.f32.mrf.mxu1 }
 0x382   :  { %723 = vst [vmem:[%s1223_s6 + $0x8] sm:$0xff] %v663_v19  ;;  %v684_v21 = vadd.f32 %v958_v20, %v775_v23 }
 0x383   :  { %v675_v27 = vpop.f32.mrf.mxu1 }
 0x384   :  { %728 = vst [vmem:[%s1223_s6 + $0x30] sm:$0xff] %v684_v21  ;;  %v676_v28 = vadd.f32 %v775_v23, %v675_v27 }
 0x385   :  { %v959_v29 = vpop.f32.mrf.mxu1 }
 0x386   :  { %726 = vst [vmem:[%s1223_s6 + $0x20] sm:$0xff] %v676_v28  ;;  %v687_v30 = vadd.f32 %v959_v29, %v775_v23 }
 0x387   :  { %v678_v31 = vpop.f32.mrf.mxu1 }
 0x388   :  { %729 = vst [vmem:[%s1223_s6 + $0x38] sm:$0xff] %v687_v30  ;;  %v679_v32 = vadd.f32 %v775_v23, %v678_v31 }
 0x389   :  { %v962_v33 = vpop.f32.mrf.mxu1 }
 0x38a   :  { %727 = vst [vmem:[%s1223_s6 + $0x28] sm:$0xff] %v679_v32  ;;  %v700_v34 = vadd.f32 %v962_v33, %v775_v23 }
 0x38b   :  { %v691_v35 = vpop.f32.mrf.mxu1 }
 0x38c   :  { %732 = vst [vmem:[%s1223_s6 + $0x50] sm:$0xff] %v700_v34  ;;  %v692_v36 = vadd.f32 %v775_v23, %v691_v35 }
 0x38d   :  { %v963_v37 = vpop.f32.mrf.mxu1 }
 0x38e   :  { %730 = vst [vmem:[%s1223_s6 + $0x40] sm:$0xff] %v692_v36  ;;  %v703_v38 = vadd.f32 %v963_v37, %v775_v23 }
 0x38f   :  { %v694_v39 = vpop.f32.mrf.mxu1 }
 0x390   :  { %733 = vst [vmem:[%s1223_s6 + $0x58] sm:$0xff] %v703_v38  ;;  %v695_v40 = vadd.f32 %v775_v23, %v694_v39 }
 0x391   :  { %v966_v41 = vpop.f32.mrf.mxu1 }
 0x392   :  { %731 = vst [vmem:[%s1223_s6 + $0x48] sm:$0xff] %v695_v40  ;;  %v716_v42 = vadd.f32 %v966_v41, %v775_v23 }
 0x393   :  { %v707_v43 = vpop.f32.mrf.mxu1 }
 0x394   :  { %736 = vst [vmem:[%s1223_s6 + $0x70] sm:$0xff] %v716_v42  ;;  %v708_v44 = vadd.f32 %v775_v23, %v707_v43 }
 0x395   :  { %v967_v45 = vpop.f32.mrf.mxu1 }
 0x396   :  { %734 = vst [vmem:[%s1223_s6 + $0x60] sm:$0xff] %v708_v44  ;;  %v719_v46 = vadd.f32 %v967_v45, %v775_v23 }
 0x397   :  { %v710_v47 = vpop.f32.mrf.mxu1 }
 0x398   :  { %737 = vst [vmem:[%s1223_s6 + $0x78] sm:$0xff] %v719_v46  ;;  %v711_v48 = vadd.f32 %v775_v23, %v710_v47 }
 0x39a   :  { %735 = vst [vmem:[%s1223_s6 + $0x68] sm:$0xff] %v711_v48 }

</bundles_post_ra>
